<compile_context>
chip_gen: v6e
topology: v6e:2x2x1
jax: 0.10.0
libtpu: 0.0.40
codegen_flags: <defaults>
</compile_context>

<pallas_src>
import jax
import jax.numpy as jnp
from jax.experimental import pallas as pl
from jax.experimental.pallas import tpu as pltpu

# ------------------------- problem sizes (small) ----------------------------
B, C_IN, H, W = 2, 4, 16, 16
C_FEAT = 8                     # channels of the synthetic feature extractor
HW = H * W                     # 256  (multiple of 128 -> full lane vregs)
K = C_IN * 9                   # im2col contraction dim (3x3 kernel)

LAYER_NAME = "layer4.2.relu_2"


# ------------------------------ Pallas kernel --------------------------------
def _extract_kernel(patches_ref, w_ref, b_ref, gram_ref, ms_ref):
    # patches_ref: (K, B*HW)   w_ref: (C_FEAT, K)   b_ref: (C_FEAT, 1)
    # gram_ref:    (B, C_FEAT, C_FEAT)              ms_ref: (B, C_FEAT, 2)
    #
    # One conv matmul over all batches; HW lives on the lane axis.
    feat = jnp.dot(w_ref[...], patches_ref[...],
                   preferred_element_type=jnp.float32)            # (C_FEAT, B*HW)
    feat = jnp.maximum(feat + b_ref[...], 0.0)                    # bias + ReLU

    for b in range(B):                                            # static unroll (B=2)
        f = feat[:, b * HW:(b + 1) * HW]                          # (C_FEAT, HW), 128-aligned
        # gram over spatial: contract the lane (HW) axis on the MXU.
        g = jax.lax.dot_general(f, f, (((1,), (1,)), ((), ())),
                                preferred_element_type=jnp.float32)
        gram_ref[b] = g.astype(gram_ref.dtype)                    # (C_FEAT, C_FEAT)

        mu = jnp.mean(f, axis=1, keepdims=True)                   # (C_FEAT, 1)
        # torch.std default: unbiased (ddof = 1)
        var = jnp.sum((f - mu) ** 2, axis=1, keepdims=True) / (HW - 1)
        ms_ref[b] = jnp.concatenate([mu, jnp.sqrt(var)], axis=1).astype(ms_ref.dtype)


_extract = pl.pallas_call(
    _extract_kernel,
    out_shape=(jax.ShapeDtypeStruct((B, C_FEAT, C_FEAT), jnp.float32),
               jax.ShapeDtypeStruct((B, C_FEAT, 2), jnp.float32)),
    grid=(1,),                                                    # single grid step
    in_specs=[
        pl.BlockSpec((K, B * HW), lambda i: (0, 0)),              # all patches at once
        pl.BlockSpec((C_FEAT, K), lambda i: (0, 0)),              # conv weight
        pl.BlockSpec((C_FEAT, 1), lambda i: (0, 0)),              # conv bias (column)
    ],
    out_specs=(pl.BlockSpec((B, C_FEAT, C_FEAT), lambda i: (0, 0, 0)),
               pl.BlockSpec((B, C_FEAT, 2), lambda i: (0, 0, 0))),
    compiler_params=pltpu.CompilerParams(dimension_semantics=("arbitrary",)),
)


# ------------------------------ glue (plain JAX) -----------------------------
def im2col_3x3_lanes(x):
    """x: (B, C, H, W) -> patches (C*9, B*H*W); HW on the fast (lane) axis."""
    b, c, h, w = x.shape
    xp = jnp.pad(x, ((0, 0), (0, 0), (1, 1), (1, 1)))
    taps = [xp[:, :, dh:dh + h, dw:dw + w] for dh in range(3) for dw in range(3)]
    patches = jnp.stack(taps, axis=2)                   # (B, C, 9, H, W)
    patches = patches.reshape(b, c * 9, h * w)          # (B, K, HW)
    return patches.transpose(1, 0, 2).reshape(c * 9, b * h * w)   # (K, B*HW)


@jax.jit
def _forward(x, w_mat, b_col):
    patches = im2col_3x3_lanes(x)                       # (K, B*HW)
    gram_bcc, ms = _extract(patches, w_mat, b_col)
    gram_flat = gram_bcc.reshape(B, C_FEAT * C_FEAT)    # == gram(x).flatten(1)
    mean = ms[:, :, 0].reshape(B, C_FEAT, 1, 1)
    std = ms[:, :, 1].reshape(B, C_FEAT, 1, 1)
    return gram_flat, mean, std


class SpatialExtractorPallas:
    """JAX/Pallas port of SpatialExtractor with a synthetic conv backbone."""

    def __init__(self, conv_w, conv_b, layers=(LAYER_NAME,), pool_method="gram"):
        # conv_w: (C_FEAT, C_IN, 3, 3)  conv_b: (C_FEAT,)
        self.pool_method = pool_method
        self.layers = list(layers)
        self.w_mat = conv_w.reshape(C_FEAT, K).astype(jnp.float32)   # MXU LHS (C_FEAT, K)
        self.b_col = conv_b.reshape(C_FEAT, 1).astype(jnp.float32)   # lane-broadcast bias

    def __call__(self, x):
        # Pooled features are computed ONCE and reused for every layer key
        # (all layers share the same stand-in backbone output).
        gram_flat, mean, std = _forward(x.astype(jnp.float32), self.w_mat, self.b_col)
        layers = sorted(self.layers)
        if self.pool_method == "gram":
            return {layer: gram_flat for layer in layers}
        means = {layer: mean for layer in layers}
        stds = {layer: std for layer in layers}
        return means, stds


# ---------------------------------- main -------------------------------------
if __name__ == "__main__":
    key = jax.random.PRNGKey(0)
    kx, kw, kb = jax.random.split(key, 3)
    x = jax.random.normal(kx, (B, C_IN, H, W), dtype=jnp.float32)
    conv_w = 0.1 * jax.random.normal(kw, (C_FEAT, C_IN, 3, 3), dtype=jnp.float32)
    conv_b = 0.1 * jax.random.normal(kb, (C_FEAT,), dtype=jnp.float32)

    # --- gram path (default) ---
    extractor = SpatialExtractorPallas(conv_w, conv_b, pool_method="gram")
    out = extractor(x)
    jax.block_until_ready(out)

    # --- mean/std path ---
    extractor_ms = SpatialExtractorPallas(conv_w, conv_b, pool_method="mean_std")
    out_ms = extractor_ms(x)
    jax.block_until_ready(out_ms)

    # Independent reference using XLA's conv (checks the im2col path too).
    feat_ref = jax.lax.conv_general_dilated(
        x, conv_w, window_strides=(1, 1), padding="SAME",
        dimension_numbers=("NCHW", "OIHW", "NCHW"))
    feat_ref = jnp.maximum(feat_ref + conv_b[None, :, None, None], 0.0)
    fr = feat_ref.reshape(B, C_FEAT, HW)
    gram_ref = jnp.einsum("bcp,bdp->bcd", fr, fr).reshape(B, -1)
    mean_ref = jnp.mean(fr, axis=2)
    std_ref = jnp.std(fr, axis=2, ddof=1)

    assert jnp.allclose(out[LAYER_NAME], gram_ref, rtol=1e-4, atol=1e-3)
    assert jnp.allclose(out_ms[0][LAYER_NAME].reshape(B, C_FEAT), mean_ref,
                        rtol=1e-4, atol=1e-5)
    assert jnp.allclose(out_ms[1][LAYER_NAME].reshape(B, C_FEAT), std_ref,
                        rtol=1e-4, atol=1e-5)

    print("KERNEL_OK")
</pallas_src>

<mosaic_0001>
module attributes {stable_mosaic.version = 11 : i64} {
  func.func @_extract_kernel(%arg0: i32, %arg1: memref<36x512xf32, #tpu.memory_space<vmem>>, %arg2: memref<8x36xf32, #tpu.memory_space<vmem>>, %arg3: memref<8x1xf32, #tpu.memory_space<vmem>>, %arg4: memref<2x8x8xf32, #tpu.memory_space<vmem>>, %arg5: memref<2x8x2xf32, #tpu.memory_space<vmem>>) attributes {dimension_semantics = [#tpu.dimension_semantics<arbitrary>], iteration_bounds = array<i64: 1>, scalar_prefetch = 0 : i64, scratch_operands = 0 : i64, tpu.core_type = #tpu.core_type<tc>, window_params = [{pipeline_mode = #tpu.pipeline_mode<synchronous>, transform_indices = @transform_0, window_bounds = array<i64: 36, 512>}, {pipeline_mode = #tpu.pipeline_mode<synchronous>, transform_indices = @transform_1, window_bounds = array<i64: 8, 36>}, {pipeline_mode = #tpu.pipeline_mode<synchronous>, transform_indices = @transform_2, window_bounds = array<i64: 8, 1>}, {pipeline_mode = #tpu.pipeline_mode<synchronous>, transform_indices = @transform_3, window_bounds = array<i64: 2, 8, 8>}, {pipeline_mode = #tpu.pipeline_mode<synchronous>, transform_indices = @transform_4, window_bounds = array<i64: 2, 8, 2>}]} {
    %c0 = arith.constant 0 : index
    %c0_0 = arith.constant 0 : index
    %0 = vector.load %arg2[%c0, %c0_0] : memref<8x36xf32, #tpu.memory_space<vmem>>, vector<8x36xf32>
    %c0_1 = arith.constant 0 : index
    %c0_2 = arith.constant 0 : index
    %1 = vector.load %arg1[%c0_1, %c0_2] : memref<36x512xf32, #tpu.memory_space<vmem>>, vector<36x512xf32>
    %cst = arith.constant dense<0.000000e+00> : vector<8x512xf32>
    %2 = tpu.matmul %0, %1, %cst {dimension_numbers = #tpu.dot_dimension_numbers<[1], [0], [0], [1], [0, 0, 1, 1], [], []>} : vector<8x36xf32>, vector<36x512xf32>, vector<8x512xf32> -> vector<8x512xf32>
    %c0_3 = arith.constant 0 : index
    %c0_4 = arith.constant 0 : index
    %3 = vector.load %arg3[%c0_3, %c0_4] : memref<8x1xf32, #tpu.memory_space<vmem>>, vector<8x1xf32>
    %4 = vector.broadcast %3 : vector<8x1xf32> to vector<8x512xf32>
    %5 = arith.addf %2, %4 : vector<8x512xf32>
    %cst_5 = arith.constant 0.000000e+00 : f32
    %6 = vector.broadcast %cst_5 : f32 to vector<8x512xf32>
    %7 = arith.maximumf %5, %6 : vector<8x512xf32>
    %8 = vector.extract_strided_slice %7 {offsets = [0, 0], sizes = [8, 256], strides = [1, 1]} : vector<8x512xf32> to vector<8x256xf32>
    %cst_6 = arith.constant dense<0.000000e+00> : vector<8x8xf32>
    %9 = tpu.matmul %8, %8, %cst_6 {dimension_numbers = #tpu.dot_dimension_numbers<[1], [1], [0], [0], [0, 0, 1, 0], [], []>} : vector<8x256xf32>, vector<8x256xf32>, vector<8x8xf32> -> vector<8x8xf32>
    %c0_7 = arith.constant 0 : index
    %c0_8 = arith.constant 0 : index
    %c0_9 = arith.constant 0 : index
    %10 = vector.load %arg4[%c0_7, %c0_8, %c0_9] : memref<2x8x8xf32, #tpu.memory_space<vmem>>, vector<1x8x8xf32>
    %11 = vector.shape_cast %10 : vector<1x8x8xf32> to vector<8x8xf32>
    %12 = vector.shape_cast %9 : vector<8x8xf32> to vector<1x8x8xf32>
    tpu.vector_store %arg4[%c0_7, %c0_8, %c0_9], %12 {strides = array<i32>} : memref<2x8x8xf32, #tpu.memory_space<vmem>>, vector<1x8x8xf32>,
    %cst_10 = arith.constant dense<0.000000e+00> : vector<8xf32>
    %13 = vector.multi_reduction <add>, %8, %cst_10 [1] : vector<8x256xf32> to vector<8xf32>
    %14 = vector.shape_cast %13 : vector<8xf32> to vector<8x1xf32>
    %cst_11 = arith.constant 2.560000e+02 : f32
    %15 = vector.broadcast %cst_11 : f32 to vector<8x1xf32>
    %16 = arith.divf %14, %15 : vector<8x1xf32>
    %17 = vector.broadcast %16 : vector<8x1xf32> to vector<8x256xf32>
    %18 = arith.subf %8, %17 : vector<8x256xf32>
    %19 = arith.mulf %18, %18 : vector<8x256xf32>
    %cst_12 = arith.constant dense<0.000000e+00> : vector<8xf32>
    %20 = vector.multi_reduction <add>, %19, %cst_12 [1] : vector<8x256xf32> to vector<8xf32>
    %21 = vector.shape_cast %20 : vector<8xf32> to vector<8x1xf32>
    %cst_13 = arith.constant 2.550000e+02 : f32
    %22 = vector.broadcast %cst_13 : f32 to vector<8x1xf32>
    %23 = arith.divf %21, %22 : vector<8x1xf32>
    %24 = math.sqrt %23 : vector<8x1xf32>
    %25 = tpu.concatenate %16, %24 in 1 : vector<8x1xf32>, vector<8x1xf32> -> vector<8x2xf32>
    %c0_14 = arith.constant 0 : index
    %c0_15 = arith.constant 0 : index
    %c0_16 = arith.constant 0 : index
    %26 = vector.load %arg5[%c0_14, %c0_15, %c0_16] : memref<2x8x2xf32, #tpu.memory_space<vmem>>, vector<1x8x2xf32>
    %27 = vector.shape_cast %26 : vector<1x8x2xf32> to vector<8x2xf32>
    %28 = vector.shape_cast %25 : vector<8x2xf32> to vector<1x8x2xf32>
    tpu.vector_store %arg5[%c0_14, %c0_15, %c0_16], %28 {strides = array<i32>} : memref<2x8x2xf32, #tpu.memory_space<vmem>>, vector<1x8x2xf32>,
    %29 = vector.extract_strided_slice %7 {offsets = [0, 256], sizes = [8, 256], strides = [1, 1]} : vector<8x512xf32> to vector<8x256xf32>
    %cst_17 = arith.constant dense<0.000000e+00> : vector<8x8xf32>
    %30 = tpu.matmul %29, %29, %cst_17 {dimension_numbers = #tpu.dot_dimension_numbers<[1], [1], [0], [0], [0, 0, 1, 0], [], []>} : vector<8x256xf32>, vector<8x256xf32>, vector<8x8xf32> -> vector<8x8xf32>
    %c1 = arith.constant 1 : index
    %c0_18 = arith.constant 0 : index
    %c0_19 = arith.constant 0 : index
    %31 = vector.load %arg4[%c1, %c0_18, %c0_19] : memref<2x8x8xf32, #tpu.memory_space<vmem>>, vector<1x8x8xf32>
    %32 = vector.shape_cast %31 : vector<1x8x8xf32> to vector<8x8xf32>
    %33 = vector.shape_cast %30 : vector<8x8xf32> to vector<1x8x8xf32>
    tpu.vector_store %arg4[%c1, %c0_18, %c0_19], %33 {strides = array<i32>} : memref<2x8x8xf32, #tpu.memory_space<vmem>>, vector<1x8x8xf32>,
    %cst_20 = arith.constant dense<0.000000e+00> : vector<8xf32>
    %34 = vector.multi_reduction <add>, %29, %cst_20 [1] : vector<8x256xf32> to vector<8xf32>
    %35 = vector.shape_cast %34 : vector<8xf32> to vector<8x1xf32>
    %cst_21 = arith.constant 2.560000e+02 : f32
    %36 = vector.broadcast %cst_21 : f32 to vector<8x1xf32>
    %37 = arith.divf %35, %36 : vector<8x1xf32>
    %38 = vector.broadcast %37 : vector<8x1xf32> to vector<8x256xf32>
    %39 = arith.subf %29, %38 : vector<8x256xf32>
    %40 = arith.mulf %39, %39 : vector<8x256xf32>
    %cst_22 = arith.constant dense<0.000000e+00> : vector<8xf32>
    %41 = vector.multi_reduction <add>, %40, %cst_22 [1] : vector<8x256xf32> to vector<8xf32>
    %42 = vector.shape_cast %41 : vector<8xf32> to vector<8x1xf32>
    %cst_23 = arith.constant 2.550000e+02 : f32
    %43 = vector.broadcast %cst_23 : f32 to vector<8x1xf32>
    %44 = arith.divf %42, %43 : vector<8x1xf32>
    %45 = math.sqrt %44 : vector<8x1xf32>
    %46 = tpu.concatenate %37, %45 in 1 : vector<8x1xf32>, vector<8x1xf32> -> vector<8x2xf32>
    %c1_24 = arith.constant 1 : index
    %c0_25 = arith.constant 0 : index
    %c0_26 = arith.constant 0 : index
    %47 = vector.load %arg5[%c1_24, %c0_25, %c0_26] : memref<2x8x2xf32, #tpu.memory_space<vmem>>, vector<1x8x2xf32>
    %48 = vector.shape_cast %47 : vector<1x8x2xf32> to vector<8x2xf32>
    %49 = vector.shape_cast %46 : vector<8x2xf32> to vector<1x8x2xf32>
    tpu.vector_store %arg5[%c1_24, %c0_25, %c0_26], %49 {strides = array<i32>} : memref<2x8x2xf32, #tpu.memory_space<vmem>>, vector<1x8x2xf32>,
    return
  }
  func.func @transform_0(%arg0: i32) -> (i32, i32) {
    %c0_i32 = arith.constant 0 : i32
    %c0_i32_0 = arith.constant 0 : i32
    %c0_i32_1 = arith.constant 0 : i32
    return %c0_i32, %c0_i32_0 : i32, i32
  }
  func.func @transform_1(%arg0: i32) -> (i32, i32) {
    %c0_i32 = arith.constant 0 : i32
    %c0_i32_0 = arith.constant 0 : i32
    %c0_i32_1 = arith.constant 0 : i32
    return %c0_i32, %c0_i32_0 : i32, i32
  }
  func.func @transform_2(%arg0: i32) -> (i32, i32) {
    %c0_i32 = arith.constant 0 : i32
    %c0_i32_0 = arith.constant 0 : i32
    %c0_i32_1 = arith.constant 0 : i32
    return %c0_i32, %c0_i32_0 : i32, i32
  }
  func.func @transform_3(%arg0: i32) -> (i32, i32, i32) {
    %c0_i32 = arith.constant 0 : i32
    %c0_i32_0 = arith.constant 0 : i32
    %c0_i32_1 = arith.constant 0 : i32
    %c0_i32_2 = arith.constant 0 : i32
    return %c0_i32, %c0_i32_0, %c0_i32_1 : i32, i32, i32
  }
  func.func @transform_4(%arg0: i32) -> (i32, i32, i32) {
    %c0_i32 = arith.constant 0 : i32
    %c0_i32_0 = arith.constant 0 : i32
    %c0_i32_1 = arith.constant 0 : i32
    %c0_i32_2 = arith.constant 0 : i32
    return %c0_i32, %c0_i32_0, %c0_i32_1 : i32, i32, i32
  }
}

</mosaic_0001>

<bundles_post_ra>
// kernel: _forward.1
= control target key start
LH: loop header
LB: loop body
LE: loop exit
PB: predicated region body
PF: predicated region fallthrough
CT: control target
= control target key end

     0   :  { %vm47_vm0 = vcmask 1043456   ;;  %v420_v3 = vmov 0.0   ;;  %vm43_vm1 = vcmask 293888   ;;  %v421_v23 = vmov 0   ;;  %s527_s0 = inlined_call_operand.vmem [shape: f32[36,512], index: 0, kind: input, shape index: {}]   ;;  %s528_s1 = inlined_call_operand.vmem [shape: f32[8,36], index: 1, kind: input, shape index: {}]   ;;  %s529_s2 = inlined_call_operand.vmem [shape: f32[8,1], index: 2, kind: input, shape index: {}]   ;;  %s530_s3 = inlined_call_operand.vmem [shape: f32[2,8,8], index: 3, kind: output, shape index: {0}]   ;;  %s531_s4 = inlined_call_operand.vmem [shape: f32[2,8,2], index: 4, kind: output, shape index: {1}]  }
   0x1   :  { %v34_v0 = vld [vmem:[%s527_s0 + $0x88] sm:$0xf]  ;;  %v36_v1 = vld [vmem:[%s527_s0 + $0x98] sm:$0xf]  ;;  %v33_v2 = vld [vmem:[%s527_s0 + $0x80] sm:$0xf]  ;;  %124 = vmatprep.mubr.f32.mxu0 %v420_v3  ;;  %195 = vmatprep.mubr.f32.mxu1 %v420_v3 }
   0x2   :  { %405 = vmatprep.subr.msk.mxu0 %vm47_vm0, %v34_v0  ;;  %408 = vmatprep.subr.msk.mxu1 %vm47_vm0, %v36_v1  ;;  %v35_v4 = vld [vmem:[%s527_s0 + $0x90] sm:$0xf]  ;;  %v30_v5 = vld [vmem:[%s527_s0 + $0x68] sm:$0xff]  ;;  %v32_v6 = vld [vmem:[%s527_s0 + $0x78] sm:$0xff]  ;;  %vm276_vm2 = vcmask 64512   ;;  %vm299_vm3 = vcmask 7168  }
   0x3   :  { %406 = vmatpush1.msk.msra.mxu0 %vm47_vm0, %v33_v2  ;;  %409 = vmatpush1.msk.msra.mxu1 %vm47_vm0, %v35_v4  ;;  %v29_v7 = vld [vmem:[%s527_s0 + $0x60] sm:$0xff]  ;;  %v31_v8 = vld [vmem:[%s527_s0 + $0x70] sm:$0xff]  ;;  %v26_v9 = vld [vmem:[%s527_s0 + $0x48] sm:$0xff]  ;;  %vm301_vm5 = vcmask 15360  }
   0x4   :  { %84 = vmatprep.subr.mxu0 %v30_v5  ;;  %155 = vmatprep.subr.mxu1 %v32_v6  ;;  %v28_v10 = vld [vmem:[%s527_s0 + $0x58] sm:$0xff]  ;;  %v25_v11 = vld [vmem:[%s527_s0 + $0x40] sm:$0xff]  ;;  %v27_v12 = vld [vmem:[%s527_s0 + $0x50] sm:$0xff] }
   0x5   :  { %85 = vmatpush1.msra.mxu0 %v29_v7  ;;  %156 = vmatpush1.msra.mxu1 %v31_v8  ;;  %v22_v13 = vld [vmem:[%s527_s0 + $0x28] sm:$0xff]  ;;  %v24_v14 = vld [vmem:[%s527_s0 + $0x38] sm:$0xff]  ;;  %v21_v15 = vld [vmem:[%s527_s0 + $0x20] sm:$0xff] }
   0x6   :  { %86 = vmatprep.subr.mxu0 %v26_v9  ;;  %157 = vmatprep.subr.mxu1 %v28_v10  ;;  %v23_v16 = vld [vmem:[%s527_s0 + $0x30] sm:$0xff]  ;;  %v18_v17 = vld [vmem:[%s527_s0 + $0x8] sm:$0xff]  ;;  %v20_v18 = vld [vmem:[%s527_s0 + $0x18] sm:$0xff] }
   0x7   :  { %87 = vmatpush1.msra.mxu0 %v25_v11  ;;  %158 = vmatpush1.msra.mxu1 %v27_v12  ;;  %v17_v19 = vld [vmem:[%s527_s0] sm:$0xff]  ;;  %v19_v20 = vld [vmem:[%s527_s0 + $0x10] sm:$0xff] }
   0x8   :  { %88 = vmatprep.subr.mxu0 %v22_v13  ;;  %159 = vmatprep.subr.mxu1 %v24_v14  ;;  %v16_v21 = vld [vmem:[%s528_s1] sm:$0xff] }
   0x9   :  { %89 = vmatpush1.msra.mxu0 %v21_v15  ;;  %160 = vmatpush1.msra.mxu1 %v23_v16  ;;  %v37_v22 = vld [vmem:[%s529_s2] sm:$0xff] }
   0xa   :  { %90 = vmatprep.subr.mxu0 %v18_v17  ;;  %161 = vmatprep.subr.mxu1 %v20_v18 }
   0xb   :  { %91 = vmatpush1.msra.mxu0 %v17_v19  ;;  %162 = vmatpush1.msra.mxu1 %v19_v20 }
   0xc   :  { %407 = vmatmul.mubr.msk.f32.vlgmr.msra.gmra.mxu0 %vm43_vm1, %v16_v21  ;;  %410 = vmatmul.mubr.msk.f32.vlgmr.msra.gmra.mxu1 %vm43_vm1, %v16_v21 }
   0xd   :  { %415 = vset.pattern.permute.xlu0 %v421_v23 }
   0xe   :  { %40 = vperm.xlu0 %415, %v37_v22  }
  0x89   :  { %v41_v24 = vpop.permute.xlu0 %40 }
  0xcc   :  { %v126_v25 = vpop.f32.mrf.mxu0  ;;  %v197_v26 = vpop.f32.mrf.mxu1 }
  0xcd   :  { %v127_v27 = vadd.f32 %v126_v25, %v41_v24  ;;  %v198_v28 = vadd.f32 %v197_v26, %v41_v24 }
  0xce   :  { %v128_v29 = vpop.f32.mrf.mxu0  ;;  %v199_v30 = vpop.f32.mrf.mxu1 }
  0xcf   :  { %v204_v31 = vmax.f32 %v198_v28, 0.0  ;;  %v129_v32 = vadd.f32 %v128_v29, %v41_v24  ;;  %v200_v33 = vadd.f32 %v199_v30, %v41_v24  ;;  %v202_v34 = vmax.f32 %v127_v27, 0.0 }
  0xd1   :  { %v203_v35 = vmax.f32 %v129_v32, 0.0  ;;  %v205_v36 = vmax.f32 %v200_v33, 0.0 }
  0xd3   :  { %236 = vmatprep.subr.mxu0 %v203_v35  ;;  %270 = vmatprep.mubr.f32.mxu0 %v203_v35  ;;  %v375_v37 = vadd.f32 %v205_v36, %v204_v31  ;;  %v278_v38 = vadd.f32 %v203_v35, %v202_v34 }
  0xd4   :  { %333 = vmatprep.subr.mxu1 %v205_v36  ;;  %367 = vmatprep.mubr.f32.mxu1 %v205_v36 }
  0xd5   :  { %237 = vmatpush1.xpose.msra.mxu0 %v202_v34  ;;  %334 = vmatpush1.xpose.msra.mxu1 %v204_v31 }
  0xd6   :  { %376 = vadd.xlane.f32.xlu1 %v375_v37  ;;  %279 = vadd.xlane.f32.xlu0 %v278_v38 }
  0xd8   :  { %271 = vmatmul.mubr.f32.vlgmr.msra.gmra.mxu0 %v202_v34  ;;  %368 = vmatmul.mubr.f32.vlgmr.msra.gmra.mxu1 %v204_v31 }
 0x15f   :  { %v377_v39 = vpop.xlane.xlu1 %376  ;;  %v280_v40 = vpop.xlane.xlu0 %279 }
 0x160   :  { %v378_v41 = vmul.f32 0.00390625, %v377_v39  ;;  %v282_v42 = vmul.f32 0.00390625, %v280_v40 }
 0x162   :  { %v283_v43 = vsub.f32 %v202_v34, %v282_v42  ;;  %v284_v44 = vsub.f32 %v203_v35, %v282_v42  ;;  %v379_v45 = vsub.f32 %v204_v31, %v378_v41  ;;  %v380_v46 = vsub.f32 %v205_v36, %v378_v41 }
 0x164   :  { %v285_v47 = vmul.f32 %v283_v43, %v283_v43  ;;  %v286_v48 = vmul.f32 %v284_v44, %v284_v44  ;;  %v381_v50 = vmul.f32 %v379_v45, %v379_v45  ;;  %v382_v51 = vmul.f32 %v380_v46, %v380_v46 }
 0x166   :  { %v287_v49 = vadd.f32 %v286_v48, %v285_v47  ;;  %v383_v52 = vadd.f32 %v382_v51, %v381_v50 }
 0x168   :  { %288 = vadd.xlane.f32.xlu1 %v287_v49 }
 0x16c   :  { %384 = vadd.xlane.f32.xlu1 %v383_v52 }
 0x198   :  { %v272_v53 = vpop.f32.mrf.mxu0  ;;  %v369_v54 = vpop.f32.mrf.mxu1 }
 0x199   :  { %277 = vst.msk [vmem:[%s530_s3] sm:$0xff] %vm276_vm2, %v272_v53  ;;  %411 = vst.msk [vmem:[%s530_s3 + $0x8] sm:$0xff] %vm276_vm2, %v369_v54 }
 0x19a   :  { %v274_v55 = vpop.f32.mrf.mxu0  ;;  %v371_v56 = vpop.f32.mrf.mxu1 }
 0x1f1   :  { %v289_v57 = vpop.xlane.xlu1 %288 }
 0x1f2   :  { %v291_v58 = vmul.f32 0.003921569, %v289_v57 }
 0x1f4   :  { %416 = vrsqrt.f32 %v291_v58  ;;  %vm294_vm4 = vcmp.eq.f32.partialorder %v291_v58, inf  ;;  %v297_v63 = vand.u32 2147483648, %v291_v58  ;;  %vm296_vm6 = vcmp.eq.f32.partialorder %v291_v58, 0.0 }
 0x1f5   :  { %v385_v59 = vpop.xlane.xlu1 %384 }
 0x1f6   :  { %v386_v60 = vmul.f32 0.003921569, %v385_v59 }
 0x1f8   :  { %418 = vrsqrt.f32 %v386_v60  ;;  %vm389_vm7 = vcmp.eq.f32.partialorder %v386_v60, inf  ;;  %v392_v5 = vand.u32 2147483648, %v386_v60  ;;  %vm391_vm8 = vcmp.eq.f32.partialorder %v386_v60, 0.0 }
 0x201   :  { %v417_v61 = vpop.eup %416 }
 0x202   :  { %v293_v62 = vmul.f32 %v417_v61, %v291_v58 }
 0x204   :  { %v295_v0 = vsel %vm294_vm4, %v291_v58, %v293_v62 }
 0x205   :  { %v419_v1 = vpop.eup %418  ;;  %v298_v2 = vsel %vm296_vm6, %v297_v63, %v295_v0 }
 0x206   :  { %v300_v3 = vsel %vm299_vm3, %v282_v42, %v298_v2  ;;  %v388_v4 = vmul.f32 %v419_v1, %v386_v60 }
 0x207   :  { %302 = vst.msk [vmem:[%s531_s4] sm:$0xff] %vm301_vm5, %v300_v3 }
 0x208   :  { %v390_v6 = vsel %vm389_vm7, %v386_v60, %v388_v4 }
 0x209   :  { %v393_v7 = vsel %vm391_vm8, %v392_v5, %v390_v6 }
 0x20a   :  { %v394_v8 = vsel %vm299_vm3, %v378_v41, %v393_v7 }
 0x20b   :  { %412 = vst.msk [vmem:[%s531_s4 + $0x8] sm:$0xff] %vm301_vm5, %v394_v8 }

</bundles_post_ra>
